<compile_context>
chip_gen: v7x
topology: tpu7x:2x2x1
jax: 0.10.0
libtpu: 0.0.40
codegen_flags: <defaults>
</compile_context>

<pallas_src>
import functools

import jax
import jax.numpy as jnp
from jax.experimental import pallas as pl
from jax.experimental.pallas import tpu as pltpu


def _necknet_kernel(x_ref, w_ref, b_ref, out_ref, *, H, W, NB):
    """One batch-group (NB images) per grid step.

    x_ref  : (C, NB*H*W) f32   input; channels on sublanes, images x pixels on lanes
    w_ref  : (C, 9*C)    bf16  BN-scale-folded conv weights (tap-major columns)
    b_ref  : (C, 1)      f32   folded BatchNorm bias
    out_ref: (C, NB*H*W) f32
    """
    HW = H * W
    L = NB * HW
    x_f32 = x_ref[...].astype(jnp.float32)            # conv input == residual
    C = x_f32.shape[0]

    # Boundary masks, computed ONCE.  H and W are powers of two, so in-image
    # coordinates come from bit-ands of a single lane iota (no VPU divides).
    col = jax.lax.broadcasted_iota(jnp.int32, (C, L), 1)
    pix = jnp.bitwise_and(col, HW - 1)                 # flat index inside an image
    xw = jnp.bitwise_and(col, W - 1)                   # x coordinate inside a row
    ok_up = pix >= W                                   # valid when y-1 >= 0
    ok_down = pix < (H - 1) * W                        # valid when y+1 <= H-1
    ok_left = xw >= 1                                  # valid when x-1 >= 0
    ok_right = xw < (W - 1)                            # valid when x+1 <= W-1

    # im2col RHS built in registers: rows k*C..k*C+C-1 hold all channels of
    # tap k = (dy, dx), zeroed outside the image (== Conv2d padding=1).
    # A roll moves pixels across image boundaries only at positions the masks
    # zero anyway, so folding NB images onto the lane axis is safe.
    rows = []
    for k in range(9):
        dy, dx = k // 3 - 1, k % 3 - 1
        off = dy * W + dx                              # flat-index shift of the tap
        tap = x_f32 if off == 0 else pltpu.roll(x_f32, shift=(-off) % L, axis=1)
        mask = None
        if dy == -1:
            mask = ok_up
        elif dy == 1:
            mask = ok_down
        if dx == -1:
            mask = ok_left if mask is None else jnp.logical_and(mask, ok_left)
        elif dx == 1:
            mask = ok_right if mask is None else jnp.logical_and(mask, ok_right)
        if mask is not None:
            tap = jnp.where(mask, tap, 0.0)
        rows.append(tap)
    rhs = jnp.concatenate(rows, axis=0).astype(jnp.bfloat16)   # (9*C, L)

    # Conv + BN scale in one MXU pass (bf16 operands, f32 accumulation); the
    # BN bias, residual add and ReLU ride in the VPU epilogue.
    conv = jnp.dot(w_ref[...], rhs, preferred_element_type=jnp.float32)  # (C, L)
    out_ref[...] = jnp.maximum(conv + b_ref[...] + x_f32, 0.0).astype(out_ref.dtype)


def _num_grid_steps(n_images, lanes_per_image):
    """2 'parallel' grid steps on v7x (2 TensorCores/chip); 1 on v5e/v6e."""
    try:
        kind = jax.devices()[0].device_kind.lower()
    except Exception:
        kind = ""
    if ("v7" in kind and n_images % 2 == 0
            and ((n_images // 2) * lanes_per_image) % 128 == 0):
        return 2
    return 1


def necknet_forward(x_nchw, weight, gamma, beta, running_mean, running_var,
                    eps=1e-5):
    """x_nchw: (N, C, H, W).  weight: (C_out, C_in, 3, 3) with C_out == C_in."""
    N, C, H, W = x_nchw.shape
    assert weight.shape == (C, C, 3, 3), "residual add requires C_out == C_in"
    # TODO(synk): non power-of-two H/W would need integer div/mod for the
    # border masks; this model family uses power-of-two feature maps.
    assert W & (W - 1) == 0 and H & (H - 1) == 0, "H, W must be powers of two"

    HW = H * W
    steps = _num_grid_steps(N, HW)
    NB = N // steps

    # Fold BN (inference) into the conv weights; the bias goes to the epilogue.
    scale = gamma / jnp.sqrt(running_var + eps)                    # (C,)
    bias = (beta - running_mean * scale).astype(jnp.float32)       # (C,)
    w_scaled = weight * scale[:, None, None, None]                 # (C, C, 3, 3)
    # (c_out, c_in, ky, kx) -> (c_out, ky, kx, c_in) -> (c_out, 9*c_in), tap-major
    # to match the RHS row order built inside the kernel.
    w_mat = jnp.transpose(w_scaled, (0, 2, 3, 1)).reshape(C, 9 * C)
    w_bf16 = w_mat.astype(jnp.bfloat16)

    # Fold the whole batch onto the lane axis: (N, C, H, W) -> (C, N*H*W).
    # Tiny wrapper relayout; the kernel then sees one lane-dense slab.
    x_cl = jnp.transpose(x_nchw.reshape(N, C, HW), (1, 0, 2)).reshape(C, N * HW)

    kernel = functools.partial(_necknet_kernel, H=H, W=W, NB=NB)

    out_cl = pl.pallas_call(
        kernel,
        out_shape=jax.ShapeDtypeStruct((C, N * HW), x_nchw.dtype),
        grid_spec=pltpu.PrefetchScalarGridSpec(
            num_scalar_prefetch=0,
            grid=(steps,),
            in_specs=[
                pl.BlockSpec((C, NB * HW), lambda s: (0, s)),
                pl.BlockSpec((C, 9 * C), lambda s: (0, 0)),
                pl.BlockSpec((C, 1), lambda s: (0, 0)),
            ],
            out_specs=pl.BlockSpec((C, NB * HW), lambda s: (0, s)),
        ),
        compiler_params=pltpu.CompilerParams(
            dimension_semantics=("parallel",)),
    )(x_cl, w_bf16, bias[:, None])

    return jnp.transpose(out_cl.reshape(C, N, HW), (1, 0, 2)).reshape(N, C, H, W)


def _reference(x_nchw, weight, gamma, beta, running_mean, running_var, eps=1e-5):
    """Pure-JAX reference (lax conv) for validation."""
    x_nhwc = jnp.transpose(x_nchw, (0, 2, 3, 1))
    w_hwio = jnp.transpose(weight, (2, 3, 1, 0))
    conv = jax.lax.conv_general_dilated(
        x_nhwc, w_hwio, window_strides=(1, 1), padding="SAME",
        dimension_numbers=("NHWC", "HWIO", "NHWC"))
    scale = gamma / jnp.sqrt(running_var + eps)
    bn = conv * scale + (beta - running_mean * scale)
    out = jnp.maximum(bn + x_nhwc, 0.0)
    return jnp.transpose(out, (0, 3, 1, 2))


if __name__ == "__main__":
    # Small shapes consistent with the module: batch=2, channels=4, spatial=16.
    N, C, H, W = 2, 4, 16, 16
    key = jax.random.PRNGKey(0)
    kx, kw, kg, kb, km, kv = jax.random.split(key, 6)

    x = jax.random.normal(kx, (N, C, H, W), dtype=jnp.float32)

    # Deterministic synthetic parameters (Conv2d weight + BatchNorm2d stats).
    fan_in = C * 3 * 3
    weight = jax.random.uniform(kw, (C, C, 3, 3), jnp.float32,
                                minval=-1.0, maxval=1.0) / jnp.sqrt(fan_in)
    gamma = 1.0 + 0.1 * jax.random.normal(kg, (C,), jnp.float32)
    beta = 0.1 * jax.random.normal(kb, (C,), jnp.float32)
    running_mean = 0.1 * jax.random.normal(km, (C,), jnp.float32)
    running_var = 1.0 + 0.1 * jax.random.uniform(kv, (C,), jnp.float32)

    out = necknet_forward(x, weight, gamma, beta, running_mean, running_var)
    out = jax.block_until_ready(out)

    ref = _reference(x, weight, gamma, beta, running_mean, running_var)
    assert out.shape == (N, C, H, W)
    # Tolerance loosened vs the f32 version because the MXU operands are bf16
    # (f32 accumulation), per the performance review's recommendation.
    max_err = jnp.max(jnp.abs(out - ref))
    assert jnp.allclose(out, ref, atol=5e-2, rtol=5e-2), f"max abs err {max_err}"

    print("KERNEL_OK")
</pallas_src>

<mosaic_0001>
module attributes {stable_mosaic.version = 11 : i64} {
  func.func @_necknet_kernel(%arg0: i32, %arg1: memref<4x512xf32, #tpu.memory_space<vmem>>, %arg2: memref<4x36xbf16, #tpu.memory_space<vmem>>, %arg3: memref<4x1xf32, #tpu.memory_space<vmem>>, %arg4: memref<4x512xf32, #tpu.memory_space<vmem>>) attributes {dimension_semantics = [#tpu.dimension_semantics<parallel>], iteration_bounds = array<i64: 1>, scalar_prefetch = 0 : i64, scratch_operands = 0 : i64, tpu.core_type = #tpu.core_type<tc>, window_params = [{transform_indices = @transform_0, window_bounds = array<i64: 4, 512>}, {pipeline_mode = #tpu.pipeline_mode<synchronous>, transform_indices = @transform_1, window_bounds = array<i64: 4, 36>}, {pipeline_mode = #tpu.pipeline_mode<synchronous>, transform_indices = @transform_2, window_bounds = array<i64: 4, 1>}, {transform_indices = @transform_3, window_bounds = array<i64: 4, 512>}]} {
    %c0 = arith.constant 0 : index
    %c0_0 = arith.constant 0 : index
    %0 = vector.load %arg1[%c0, %c0_0] : memref<4x512xf32, #tpu.memory_space<vmem>>, vector<4x512xf32>
    %1 = tpu.iota {dimensions = array<i32: 1>} : vector<4x512xi32>
    %c255_i32 = arith.constant 255 : i32
    %2 = vector.broadcast %c255_i32 : i32 to vector<4x512xi32>
    %3 = arith.andi %1, %2 : vector<4x512xi32>
    %c15_i32 = arith.constant 15 : i32
    %4 = vector.broadcast %c15_i32 : i32 to vector<4x512xi32>
    %5 = arith.andi %1, %4 : vector<4x512xi32>
    %c16_i32 = arith.constant 16 : i32
    %6 = vector.broadcast %c16_i32 : i32 to vector<4x512xi32>
    %7 = arith.cmpi sge, %3, %6 : vector<4x512xi32>
    %c240_i32 = arith.constant 240 : i32
    %8 = vector.broadcast %c240_i32 : i32 to vector<4x512xi32>
    %9 = arith.cmpi slt, %3, %8 : vector<4x512xi32>
    %c1_i32 = arith.constant 1 : i32
    %10 = vector.broadcast %c1_i32 : i32 to vector<4x512xi32>
    %11 = arith.cmpi sge, %5, %10 : vector<4x512xi32>
    %c15_i32_1 = arith.constant 15 : i32
    %12 = vector.broadcast %c15_i32_1 : i32 to vector<4x512xi32>
    %13 = arith.cmpi slt, %5, %12 : vector<4x512xi32>
    %c17_i32 = arith.constant 17 : i32
    %14 = tpu.dynamic_rotate %0 by %c17_i32 dim 1 : vector<4x512xf32>, i32 -> vector<4x512xf32>
    %15 = arith.andi %7, %11 : vector<4x512xi1>
    %cst = arith.constant 0.000000e+00 : f32
    %16 = vector.broadcast %cst : f32 to vector<4x512xf32>
    %17 = arith.select %15, %14, %16 : vector<4x512xi1>, vector<4x512xf32>
    %c16_i32_2 = arith.constant 16 : i32
    %18 = tpu.dynamic_rotate %0 by %c16_i32_2 dim 1 : vector<4x512xf32>, i32 -> vector<4x512xf32>
    %cst_3 = arith.constant 0.000000e+00 : f32
    %19 = vector.broadcast %cst_3 : f32 to vector<4x512xf32>
    %20 = arith.select %7, %18, %19 : vector<4x512xi1>, vector<4x512xf32>
    %c15_i32_4 = arith.constant 15 : i32
    %21 = tpu.dynamic_rotate %0 by %c15_i32_4 dim 1 : vector<4x512xf32>, i32 -> vector<4x512xf32>
    %22 = arith.andi %7, %13 : vector<4x512xi1>
    %cst_5 = arith.constant 0.000000e+00 : f32
    %23 = vector.broadcast %cst_5 : f32 to vector<4x512xf32>
    %24 = arith.select %22, %21, %23 : vector<4x512xi1>, vector<4x512xf32>
    %c1_i32_6 = arith.constant 1 : i32
    %25 = tpu.dynamic_rotate %0 by %c1_i32_6 dim 1 : vector<4x512xf32>, i32 -> vector<4x512xf32>
    %cst_7 = arith.constant 0.000000e+00 : f32
    %26 = vector.broadcast %cst_7 : f32 to vector<4x512xf32>
    %27 = arith.select %11, %25, %26 : vector<4x512xi1>, vector<4x512xf32>
    %c511_i32 = arith.constant 511 : i32
    %28 = tpu.dynamic_rotate %0 by %c511_i32 dim 1 : vector<4x512xf32>, i32 -> vector<4x512xf32>
    %cst_8 = arith.constant 0.000000e+00 : f32
    %29 = vector.broadcast %cst_8 : f32 to vector<4x512xf32>
    %30 = arith.select %13, %28, %29 : vector<4x512xi1>, vector<4x512xf32>
    %c497_i32 = arith.constant 497 : i32
    %31 = tpu.dynamic_rotate %0 by %c497_i32 dim 1 : vector<4x512xf32>, i32 -> vector<4x512xf32>
    %32 = arith.andi %9, %11 : vector<4x512xi1>
    %cst_9 = arith.constant 0.000000e+00 : f32
    %33 = vector.broadcast %cst_9 : f32 to vector<4x512xf32>
    %34 = arith.select %32, %31, %33 : vector<4x512xi1>, vector<4x512xf32>
    %c496_i32 = arith.constant 496 : i32
    %35 = tpu.dynamic_rotate %0 by %c496_i32 dim 1 : vector<4x512xf32>, i32 -> vector<4x512xf32>
    %cst_10 = arith.constant 0.000000e+00 : f32
    %36 = vector.broadcast %cst_10 : f32 to vector<4x512xf32>
    %37 = arith.select %9, %35, %36 : vector<4x512xi1>, vector<4x512xf32>
    %c495_i32 = arith.constant 495 : i32
    %38 = tpu.dynamic_rotate %0 by %c495_i32 dim 1 : vector<4x512xf32>, i32 -> vector<4x512xf32>
    %39 = arith.andi %9, %13 : vector<4x512xi1>
    %cst_11 = arith.constant 0.000000e+00 : f32
    %40 = vector.broadcast %cst_11 : f32 to vector<4x512xf32>
    %41 = arith.select %39, %38, %40 : vector<4x512xi1>, vector<4x512xf32>
    %42 = tpu.concatenate %17, %20, %24, %27, %0, %30, %34, %37, %41 in 0 : vector<4x512xf32>, vector<4x512xf32>, vector<4x512xf32>, vector<4x512xf32>, vector<4x512xf32>, vector<4x512xf32>, vector<4x512xf32>, vector<4x512xf32>, vector<4x512xf32> -> vector<36x512xf32>
    %43 = arith.truncf %42 : vector<36x512xf32> to vector<36x512xbf16>
    %c0_12 = arith.constant 0 : index
    %c0_13 = arith.constant 0 : index
    %44 = vector.load %arg2[%c0_12, %c0_13] : memref<4x36xbf16, #tpu.memory_space<vmem>>, vector<4x36xbf16>
    %cst_14 = arith.constant dense<0.000000e+00> : vector<4x512xf32>
    %45 = tpu.matmul %44, %43, %cst_14 {dimension_numbers = #tpu.dot_dimension_numbers<[1], [0], [0], [1], [0, 0, 1, 1], [], []>} : vector<4x36xbf16>, vector<36x512xbf16>, vector<4x512xf32> -> vector<4x512xf32>
    %c0_15 = arith.constant 0 : index
    %c0_16 = arith.constant 0 : index
    %46 = vector.load %arg3[%c0_15, %c0_16] : memref<4x1xf32, #tpu.memory_space<vmem>>, vector<4x1xf32>
    %47 = vector.broadcast %46 : vector<4x1xf32> to vector<4x512xf32>
    %48 = arith.addf %45, %47 : vector<4x512xf32>
    %49 = arith.addf %48, %0 : vector<4x512xf32>
    %cst_17 = arith.constant 0.000000e+00 : f32
    %50 = vector.broadcast %cst_17 : f32 to vector<4x512xf32>
    %51 = arith.maximumf %49, %50 : vector<4x512xf32>
    %c0_18 = arith.constant 0 : index
    %c0_19 = arith.constant 0 : index
    %52 = vector.load %arg4[%c0_18, %c0_19] : memref<4x512xf32, #tpu.memory_space<vmem>>, vector<4x512xf32>
    tpu.vector_store %arg4[%c0_18, %c0_19], %51 {strides = array<i32>} : memref<4x512xf32, #tpu.memory_space<vmem>>, vector<4x512xf32>,
    return
  }
  func.func @transform_0(%arg0: i32) -> (i32, i32) {
    %c0_i32 = arith.constant 0 : i32
    %c0_i32_0 = arith.constant 0 : i32
    return %c0_i32, %arg0 : i32, i32
  }
  func.func @transform_1(%arg0: i32) -> (i32, i32) {
    %c0_i32 = arith.constant 0 : i32
    %c0_i32_0 = arith.constant 0 : i32
    %c0_i32_1 = arith.constant 0 : i32
    return %c0_i32, %c0_i32_0 : i32, i32
  }
  func.func @transform_2(%arg0: i32) -> (i32, i32) {
    %c0_i32 = arith.constant 0 : i32
    %c0_i32_0 = arith.constant 0 : i32
    %c0_i32_1 = arith.constant 0 : i32
    return %c0_i32, %c0_i32_0 : i32, i32
  }
  func.func @transform_3(%arg0: i32) -> (i32, i32) {
    %c0_i32 = arith.constant 0 : i32
    %c0_i32_0 = arith.constant 0 : i32
    return %c0_i32, %arg0 : i32, i32
  }
}

</mosaic_0001>

<bundles_post_ra>
// kernel: tpu_custom_call.1
= control target key start
LH: loop header
LB: loop body
LE: loop exit
PB: predicated region body
PF: predicated region fallthrough
CT: control target
= control target key end

     0   :  { %8 = vsyncpa [#allocation3], 0  ;;  %s922_s0 = inlined_call_operand.hbm [shape: f32[4,512], index: 0, kind: input, shape index: {}]   ;;  %s923_s1 = inlined_call_operand.vmem [shape: bf16[4,36], index: 1, kind: input, shape index: {}]   ;;  %s924_s2 = inlined_call_operand.vmem [shape: f32[4,1], index: 2, kind: input, shape index: {}]   ;;  %s925_s3 = inlined_call_operand.hbm [shape: f32[4,512], index: 3, kind: output, shape index: {}]  }
   0x1   :  { %9 = vsyncpa [#allocation4], 0  ;;  %s579_s12 = smov [#allocation2]   ;;  %s531_s16 = scalar_lea.hbm %s922_s0, 256 }
   0x2   :  { %s16_s13 = sshll.u32 %s579_s12, 4  ;;  %p532_p0 = scmp.ne.s32.totalorder %s922_s0, %s531_s16  ;;  %s17_s13 = int_to_ptr.vmem [resolvable:$true] %s16_s13 }
   0x3   :  { %p535_p1 = scmp.lt.u32.totalorder %s531_s16, %s922_s0 }
   0x5   :  { %p537_p2 = pnand %p535_p1, %p532_p0 }
   0x7   :  { %540 = shalt.err (!%p537_p2)
}
   0x8   :  { %s541_s21 = scalar_lea.vmem %s17_s13, 256  ;;  %p546_p4 = scmp.lt.s32.totalorder %s17_s13, %s17_s13 }
   0x9   :  { %p542_p3 = scmp.ne.s32.totalorder %s17_s13, %s541_s21  ;;  %p547_p5 = scmp.lt.s32.totalorder %s541_s21, %s541_s21 }
   0xb   :  { %p548_p6 = por %p547_p5, %p546_p4 }
   0xd   :  { %p549_p7 = pnand %p548_p6, %p542_p3 }
   0xf   :  { %552 = shalt.err (!%p549_p7)
}
  0x10   :  { %19 = dma.hbm_to_vmem [thread:$0]  %s922_s0, 256, %s17_s13, [#allocation3]  }
  0x11   :  { %575 = dma.done.wait [#allocation3], 256  }
  0x12   :  { %576 = vsyncadd [#allocation3], 4294967040  ;;  %v622_v0 = vld [vmem:[#allocation2] sm:$0xff]  ;;  %v624_v1 = vld [vmem:[#allocation2 + $0x8] sm:$0xff]  ;;  %s580_s24 = smov 16   ;;  %s581_s0 = smov 1   ;;  %v30_v8 = vlaneseq }
  0x13   :  { %v628_v2 = vcombine.high %v622_v0, %v622_v0  ;;  %v632_v3 = vcombine.high %v624_v1, %v624_v1  ;;  %s582_s25 = smov 17   ;;  %s583_s26 = smov 15   ;;  %v588_v6 = vmov 0   ;;  %v295_v7 = vld [vmem:[%s924_s2] sm:$0xf]  ;;  %v932_v20 = vmov 0 }
  0x14   :  { %s584_s27 = smov 127   ;;  %s585_s28 = smov 112   ;;  %350 = vmatprep.mubr.bf16.mxu0 %v588_v6  ;;  %391 = vmatprep.mubr.bf16.mxu1 %v588_v6  ;;  %v641_v9 = vand.u32 127, %v30_v8  ;;  %v936_v27 = vmov 0  ;;  %vm927_vm6 = vcmask 1043456   ;;  %v942_v35 = vmov 0 }
  0x15   :  { %v458_v4 = vpack.i.bf16 %v628_v2, %v622_v0  ;;  %v463_v5 = vpack.i.bf16 %v632_v3, %v624_v1  ;;  %s586_s29 = smov 113   ;;  %s587_s30 = smov 111   ;;  %528 = vset.pattern.permute.xlu0 %v588_v6 }
  0x16   :  { %v644_v10 = vadd.s32 128, %v641_v9  ;;  %v647_v11 = vadd.s32 384, %v641_v9  ;;  %v33_v12 = vadd.s32 256, %v641_v9  ;;  %vm132_vm0 = vcmp.lt.s32.totalorder %v641_v9, 1 }
  0x17   :  { %459 = vrot.lane.b32.xlu1 %v458_v4, %s580_s24  ;;  %449 = vrot.lane.b32.xlu0 %v458_v4, %s581_s0  ;;  %vm94_vm1 = vcmp.lt.s32.totalorder %v641_v9, 16  ;;  %v35_v15 = vand.u32 255, %v641_v9  ;;  %v39_v19 = vand.u32 15, %v641_v9  ;;  %vm73_vm4 = vcmp.lt.s32.totalorder %v641_v9, 17 }
  0x18   :  { %v40_v13 = vand.u32 15, %v644_v10  ;;  %v42_v14 = vand.u32 15, %v647_v11  ;;  %v41_v18 = vand.u32 15, %v33_v12  ;;  %v37_v21 = vand.u32 255, %v33_v12 }
  0x19   :  { %vm660_vm3 = vcmp.lt.s32.totalorder %v39_v19, 15  ;;  %vm673_vm7 = vcmp.ge.s32.totalorder %v35_v15, 16  ;;  %vm684_vm10 = vcmp.ge.s32.totalorder %v39_v19, 1  ;;  %v36_v44 = vand.u32 255, %v644_v10 }
  0x1a   :  { %vm656_vm2 = vcmp.ge.s32.totalorder %v40_v13, 1  ;;  %vm665_vm5 = vcmp.ge.s32.totalorder %v42_v14, 1  ;;  %vm677_vm8 = vcmp.lt.s32.totalorder %v41_v18, 15  ;;  %v943_v35 = vsel %vm684_vm10, 4294967295, %v942_v35 }
  0x1b   :  { %464 = vrot.lane.b32.xlu1 %v463_v5, %s580_s24  ;;  %454 = vrot.lane.b32.xlu0 %v463_v5, %s581_s0  ;;  %v933_v20 = vsel %vm656_vm2, 4294967295, %v932_v20  ;;  %v937_v27 = vsel %vm665_vm5, 4294967295, %v936_v27  ;;  %vm688_vm11 = vcmp.ge.s32.totalorder %v37_v21, 16  ;;  %vm692_vm12 = vcmp.ge.s32.totalorder %v41_v18, 1 }
  0x1c   :  { %vm696_vm13 = vcmp.lt.s32.totalorder %v40_v13, 15  ;;  %vm700_vm14 = vcmp.lt.s32.totalorder %v42_v14, 15  ;;  %v38_v45 = vand.u32 255, %v647_v11  ;;  %vm754_vm15 = vcmp.lt.s32.totalorder %v36_v44, 240 }
  0x1f   :  { %474 = vrot.lane.b32.xlu1 %v463_v5, %s582_s25  ;;  %469 = vrot.lane.b32.xlu0 %v458_v4, %s582_s25 }
  0x23   :  { %484 = vrot.lane.b32.xlu1 %v463_v5, %s583_s26  ;;  %479 = vrot.lane.b32.xlu0 %v458_v4, %s583_s26 }
  0x27   :  { %494 = vrot.lane.b32.xlu1 %v463_v5, %s584_s27  ;;  %489 = vrot.lane.b32.xlu0 %v458_v4, %s584_s27 }
  0x2b   :  { %504 = vrot.lane.b32.xlu1 %v463_v5, %s585_s28  ;;  %499 = vrot.lane.b32.xlu0 %v458_v4, %s585_s28 }
  0x2f   :  { %514 = vrot.lane.b32.xlu1 %v463_v5, %s586_s29  ;;  %509 = vrot.lane.b32.xlu0 %v458_v4, %s586_s29 }
  0x33   :  { %524 = vrot.lane.b32.xlu1 %v463_v5, %s587_s30  ;;  %519 = vrot.lane.b32.xlu0 %v458_v4, %s587_s30 }
  0x37   :  { %298 = vperm.xlu0 %528, %v295_v7  }
  0x89   :  { %v460_v16 = vpop.permute.xlu1 %459  ;;  %v450_v17 = vpop.permute.xlu0 %449 }
  0x8a   :  { %v462_v22 = vunpack.i.h.bf16 %v460_v16  ;;  %v461_v23 = vunpack.i.l.bf16 %v460_v16  ;;  %v452_v24 = vunpack.i.h.bf16 %v450_v17  ;;  %v451_v25 = vunpack.i.l.bf16 %v450_v17 }
  0x8c   :  { %v135_v28 = vsel %vm132_vm0, %v451_v25, %v452_v24  ;;  %v97_v29 = vsel %vm94_vm1, %v461_v23, %v462_v22 }
  0x8d   :  { %v465_v31 = vpop.permute.xlu1 %464  ;;  %v455_v32 = vpop.permute.xlu0 %454  ;;  %v138_v34 = vsel %vm656_vm2, %v135_v28, 0.0  ;;  %v222_v46 = vrot.slane %v97_v29, 4 }
  0x8e   :  { %v467_v38 = vunpack.i.h.bf16 %v465_v31  ;;  %v466_v39 = vunpack.i.l.bf16 %v465_v31  ;;  %v457_v40 = vunpack.i.h.bf16 %v455_v32  ;;  %v456_v41 = vunpack.i.l.bf16 %v455_v32 }
  0x8f   :  { %v234_v47 = vrot.slane %v138_v34, 4 }
  0x90   :  { %v708_v48 = vsel %vm94_vm1, %v462_v22, %v466_v39  ;;  %v98_v49 = vsel %vm94_vm1, %v467_v38, %v461_v23  ;;  %v133_v50 = vsel %vm132_vm0, %v456_v41, %v457_v40  ;;  %v716_v51 = vsel %vm132_vm0, %v452_v24, %v456_v41 }
  0x91   :  { %v136_v52 = vsel %vm132_vm0, %v457_v40, %v451_v25  ;;  %v475_v53 = vpop.permute.xlu1 %474  ;;  %v470_v54 = vpop.permute.xlu0 %469  ;;  %v95_v55 = vsel %vm94_vm1, %v466_v39, %v467_v38  ;;  %v140_v56 = vsel %vm665_vm5, %v133_v50, 0.0  ;;  %v99_v57 = vsel %vm673_vm7, %v98_v49, 0.0  ;;  %vm78_vm0 = vmand %vm673_vm7, %vm684_vm10 }
  0x92   :  { %v477_v58 = vunpack.i.h.bf16 %v475_v53  ;;  %v476_v59 = vunpack.i.l.bf16 %v475_v53  ;;  %v472_v60 = vunpack.i.h.bf16 %v470_v54  ;;  %v471_v61 = vunpack.i.l.bf16 %v470_v54 }
  0x93   :  { %v224_v62 = vrot.slane %v95_v55, 4  ;;  %v236_v63 = vrot.slane %v140_v56, 4  ;;  %v137_v4 = vsel %vm684_vm10, %v136_v52, 0.0  ;;  %v221_v5 = vrot.slane %v99_v57, 4 }
  0x94   :  { %v76_v6 = vsel %vm73_vm4, %v471_v61, %v472_v60  ;;  %v74_v7 = vsel %vm73_vm4, %v476_v59, %v477_v58  ;;  %v77_v8 = vsel %vm73_vm4, %v477_v58, %v471_v61  ;;  %v233_v10 = vrot.slane %v137_v4, 4 }
  0x95   :  { %v485_v11 = vpop.permute.xlu1 %484  ;;  %v480_v12 = vpop.permute.xlu0 %479  ;;  %v83_v13 = vsel %vm656_vm2, %v76_v6, 0.0  ;;  %v85_v14 = vsel %vm665_vm5, %v74_v7, 0.0  ;;  %v82_v15 = vsel %vm78_vm0, %v77_v8, 0.0  ;;  %v75_v16 = vsel %vm73_vm4, %v472_v60, %v476_v59  ;;  %vm956_vm4 = vmand %vm688_vm11, %vm692_vm12 }
  0x96   :  { %v487_v17 = vunpack.i.h.bf16 %v485_v11  ;;  %v486_v18 = vunpack.i.l.bf16 %v485_v11  ;;  %v482_v19 = vunpack.i.h.bf16 %v480_v12  ;;  %v481_v21 = vunpack.i.l.bf16 %v480_v12 }
  0x97   :  { %vm758_vm1 = vcmp.lt.s32.totalorder %v38_v45, 240  ;;  %v267_v24 = vsel %vm927_vm6, %v83_v13, %v222_v46  ;;  %v269_v25 = vsel %vm927_vm6, %v85_v14, %v224_v62  ;;  %v266_v28 = vsel %vm927_vm6, %v82_v15, %v221_v5  ;;  %vm118_vm6 = vmand %vm688_vm11, %vm677_vm8 }
  0x98   :  { %v770_v29 = vsel %vm956_vm4, %v75_v16, 0.0  ;;  %vm957_vm0 = vcmp.lt.s32.totalorder %v641_v9, 15  ;;  %v101_v38 = vsel %vm688_vm11, %v708_v48, 0.0  ;;  %vm962_vm11 = vcmask 1043456  }
  0x99   :  { %v114_v31 = vsel %vm957_vm0, %v481_v21, %v482_v19  ;;  %vm958_vm9 = vmmov %vm957_vm0  ;;  %v495_v39 = vpop.permute.xlu1 %494  ;;  %v490_v40 = vpop.permute.xlu0 %489  ;;  %vm166_vm5 = vcmp.lt.s32.totalorder %v641_v9, 113  ;;  %vm965_vm2 = vcmp.lt.s32.totalorder %v641_v9, 127 }
  0x9a   :  { %v112_v32 = vsel %vm958_vm9, %v486_v18, %v487_v17  ;;  %vm959_vm10 = vmmov %vm957_vm0  ;;  %v121_v41 = vsel %vm696_vm13, %v114_v31, 0.0  ;;  %v497_v48 = vunpack.i.h.bf16 %v495_v39  ;;  %v496_v36 = vunpack.i.l.bf16 %v495_v39 }
  0x9b   :  { %v115_v34 = vsel %vm959_vm10, %v487_v17, %v481_v21  ;;  %v123_v44 = vsel %vm700_vm14, %v112_v32, 0.0  ;;  %vm960_vm9 = vmand %vm673_vm7, %vm660_vm3  ;;  %v492_v49 = vunpack.i.h.bf16 %v490_v40  ;;  %v491_v50 = vunpack.i.l.bf16 %v490_v40 }
  0x9c   :  { %v120_v45 = vsel %vm960_vm9, %v115_v34, 0.0  ;;  %vm961_vm10 = vmmov %vm957_vm0  ;;  %v271_v52 = vsel %vm962_vm11, %v121_v41, %v234_v47  ;;  %v150_v30 = vsel %vm965_vm2, %v496_v36, %v497_v48  ;;  %v139_v34 = vsel %vm692_vm12, %v716_v51, 0.0 }
  0x9d   :  { %v113_v46 = vsel %vm961_vm10, %v482_v19, %v486_v18  ;;  %vm963_vm4 = vmmov %vm962_vm11  ;;  %v156_v47 = vsel %vm677_vm8, %v150_v30, 0.0  ;;  %v505_v60 = vpop.permute.xlu1 %504  ;;  %v500_v61 = vpop.permute.xlu0 %499  ;;  %v223_v41 = vrot.slane %v101_v38, 4 }
  0x9e   :  { %v273_v53 = vsel %vm963_vm4, %v123_v44, %v236_v63  ;;  %vm964_vm0 = vmmov %vm963_vm4  ;;  %v122_v55 = vsel %vm118_vm6, %v113_v46, 0.0  ;;  %v283_v63 = vpack.c.bf16 %v271_v52, %v267_v24  ;;  %v814_v4 = vrot.slane %v156_v47, 4 }
  0x9f   :  { %v270_v54 = vsel %vm964_vm0, %v120_v45, %v233_v10  ;;  %vm966_vm7 = vmmov %vm965_vm2  ;;  %v507_v6 = vunpack.i.h.bf16 %v505_v60  ;;  %v506_v7 = vunpack.i.l.bf16 %v505_v60  ;;  %v502_v8 = vunpack.i.h.bf16 %v500_v61 }
  0xa0   :  { %v151_v56 = vsel %vm966_vm7, %v492_v49, %v496_v36  ;;  %vm967_vm9 = vmmov %vm965_vm2  ;;  %v501_v10 = vunpack.i.l.bf16 %v500_v61  ;;  %318 = vmatprep.subr.bf16.mxu0 %v283_v63  ;;  %vm969_vm6 = vcmp.lt.s32.totalorder %v641_v9, 112  ;;  %v285_v15 = vpack.c.bf16 %v273_v53, %v269_v25 }
  0xa1   :  { %v152_v57 = vsel %vm967_vm9, %v491_v50, %v492_v49  ;;  %vm968_vm10 = vmmov %vm965_vm2  ;;  %v155_v62 = vsel %vm696_vm13, %v151_v56, 0.0  ;;  %v821_v13 = vsel %vm969_vm6, %v506_v7, %v507_v6  ;;  %v282_v16 = vpack.c.bf16 %v270_v54, %v266_v28  ;;  %v515_v24 = vpop.permute.xlu1 %514  ;;  %v510_v31 = vpop.permute.xlu0 %509 }
  0xa2   :  { %v153_v58 = vsel %vm968_vm10, %v497_v48, %v491_v50  ;;  %v154_v59 = vsel %vm660_vm3, %v152_v57, 0.0  ;;  %v246_v11 = vrot.slane %v155_v62, 4  ;;  %v259_v17 = vrot.slane %v821_v13, 4  ;;  %vm970_vm11 = vmmov %vm969_vm6  ;;  %359 = vmatprep.subr.bf16.mxu1 %v285_v15 }
  0xa3   :  { %v245_v5 = vrot.slane %v154_v59, 4  ;;  %v157_v12 = vsel %vm700_vm14, %v153_v58, 0.0  ;;  %v189_v18 = vsel %vm970_vm11, %v502_v8, %v506_v7  ;;  %vm971_vm4 = vmmov %vm969_vm6  ;;  %319 = vmatpush1.bf16.msra.mxu0 %v282_v16  ;;  %v235_v44 = vrot.slane %v139_v34, 4 }
  0xa4   :  { %v248_v14 = vrot.slane %v157_v12, 4  ;;  %v190_v19 = vsel %vm971_vm4, %v501_v10, %v502_v8  ;;  %vm972_vm0 = vmmov %vm971_vm4  ;;  %v193_v32 = vsel %vm754_vm15, %v189_v18, 0.0  ;;  %vm973_vm7 = vnez %v933_v20 }
  0xa5   :  { %v191_v21 = vsel %vm972_vm0, %v507_v6, %v501_v10  ;;  %v257_v28 = vrot.slane %v190_v19, 4  ;;  %v258_v39 = vrot.slane %v193_v32, 4  ;;  %vm172_vm9 = vmand %vm754_vm15, %vm973_vm7  ;;  %v517_v45 = vunpack.i.h.bf16 %v515_v24  ;;  %v525_v49 = vpop.permute.xlu1 %524  ;;  %v520_v50 = vpop.permute.xlu0 %519 }
  0xa6   :  { %v195_v25 = vsel %vm758_vm1, %v191_v21, 0.0  ;;  %v516_v46 = vunpack.i.l.bf16 %v515_v24  ;;  %v512_v48 = vunpack.i.h.bf16 %v510_v31  ;;  %v511_v36 = vunpack.i.l.bf16 %v510_v31 }
  0xa7   :  { %v260_v40 = vrot.slane %v195_v25, 4  ;;  %vm974_vm10 = vnez %v937_v27  ;;  %vm975_vm11 = vcmask 1043456   ;;  %v527_v57 = vunpack.i.h.bf16 %v525_v49 }
  0xa8   :  { %vm174_vm6 = vmand %vm758_vm1, %vm974_vm10  ;;  %v268_v51 = vsel %vm975_vm11, %v770_v29, %v223_v41  ;;  %v167_v30 = vsel %vm166_vm5, %v516_v46, %v517_v45  ;;  %v168_v56 = vsel %vm166_vm5, %v512_v48, %v516_v46  ;;  %v169_v29 = vsel %vm166_vm5, %v511_v36, %v512_v48 }
  0xa9   :  { %vm976_vm4 = vmmov %vm975_vm11  ;;  %v526_v58 = vunpack.i.l.bf16 %v525_v49  ;;  %v522_v47 = vunpack.i.h.bf16 %v520_v50  ;;  %v521_v59 = vunpack.i.l.bf16 %v520_v50  ;;  %v176_v42 = vsel %vm172_vm9, %v168_v56, 0.0 }
  0xaa   :  { %v272_v38 = vsel %vm976_vm4, %v122_v55, %v235_v44  ;;  %vm977_vm0 = vmmov %vm976_vm4  ;;  %v170_v55 = vsel %vm166_vm5, %v517_v45, %v511_v36  ;;  %vm979_vm5 = vnez %v943_v35  ;;  %v177_v8 = vsel %vm692_vm12, %v167_v30, 0.0 }
  0xab   :  { %v275_v52 = vsel %vm977_vm0, %v628_v2, %v246_v11  ;;  %vm978_vm2 = vmmov %vm977_vm0  ;;  %v284_v54 = vpack.c.bf16 %v272_v38, %v268_v51  ;;  %v178_v60 = vsel %vm174_vm6, %v170_v55, 0.0  ;;  %v175_v43 = vsel %vm979_vm5, %v169_v29, 0.0 }
  0xac   :  { %v277_v53 = vsel %vm978_vm2, %v632_v3, %v248_v14  ;;  %vm210_vm11 = vmand %vm754_vm15, %vm696_vm13  ;;  %vm980_vm13 = vcmp.lt.s32.totalorder %v641_v9, 111  ;;  %v274_v20 = vsel %vm977_vm0, %v622_v0, %v245_v5  ;;  %vm305_vm10 = vcmask 1041408   ;;  %v294_v9 = vld [vmem:[%s923_s1] sm:$0x3]  ;;  %s589_s1 = smov [#allocation5]  }
  0xad   :  { %vm212_vm2 = vmand %vm758_vm1, %vm700_vm14  ;;  %360 = vmatpush1.bf16.msra.mxu1 %v284_v54  ;;  %v206_v61 = vsel %vm980_vm13, %v522_v47, %v526_v58  ;;  %vm301_vm12 = vcmask 293888   ;;  %s424_s7 = sshll.u32 %s589_s1, 4  ;;  %s425_s7 = int_to_ptr.vmem [resolvable:$true] %s424_s7 }
  0xae   :  { %vm981_vm14 = vmmov %vm977_vm0  ;;  %v214_v63 = vsel %vm210_vm11, %v206_v61, 0.0  ;;  %s553_s8 = scalar_lea.vmem %s425_s7, 256  ;;  %p558_p9 = scmp.lt.s32.totalorder %s425_s7, %s425_s7 }
  0xaf   :  { %v279_v62 = vsel %vm981_vm14, %v176_v42, %v258_v39  ;;  %vm982_vm4 = vmmov %vm977_vm0  ;;  %v291_v12 = vpack.c.bf16 %v214_v63, %v214_v63  ;;  %p554_p8 = scmp.ne.s32.totalorder %s425_s7, %s553_s8  ;;  %p559_p10 = scmp.lt.s32.totalorder %s553_s8, %s553_s8 }
  0xb0   :  { %v281_v22 = vsel %vm982_vm4, %v178_v60, %v260_v40  ;;  %vm983_vm15 = vmmov %vm980_vm13  ;;  %v287_v27 = vpack.c.bf16 %v279_v62, %v275_v52 }
  0xb1   :  { %v208_v23 = vsel %vm983_vm15, %v527_v57, %v521_v59  ;;  %v289_v6 = vpack.c.bf16 %v281_v22, %v277_v53  ;;  %vm984_vm1 = vmmov %vm977_vm0  ;;  %p560_p11 = por %p559_p10, %p558_p9 }
  0xb2   :  { %v216_v7 = vsel %vm212_vm2, %v208_v23, 0.0  ;;  %v278_v35 = vsel %vm984_vm1, %v175_v43, %v257_v28  ;;  %vm985_vm7 = vmmov %vm977_vm0  ;;  %320 = vmatprep.subr.bf16.mxu0 %v287_v27 }
  0xb3   :  { %v276_v10 = vsel %vm985_vm7, %v624_v1, %v814_v4  ;;  %361 = vmatprep.subr.bf16.mxu1 %v289_v6  ;;  %v286_v11 = vpack.c.bf16 %v278_v35, %v274_v20  ;;  %vm986_vm9 = vmmov %vm977_vm0  ;;  %v293_v14 = vpack.c.bf16 %v216_v7, %v216_v7  ;;  %p561_p12 = pnand %p560_p11, %p554_p8 }
  0xb4   :  { %v280_v5 = vsel %vm986_vm9, %v177_v8, %v259_v17  ;;  %vm987_vm6 = vmmov %vm980_vm13 }
  0xb5   :  { %v288_v13 = vpack.c.bf16 %v280_v5, %v276_v10  ;;  %v207_v15 = vsel %vm987_vm6, %v521_v59, %v522_v47  ;;  %vm988_vm11 = vmmov %vm987_vm6  ;;  %321 = vmatpush1.bf16.msra.mxu0 %v286_v11 }
  0xb6   :  { %v205_v37 = vsel %vm988_vm11, %v526_v58, %v527_v57  ;;  %v213_v16 = vsel %vm660_vm3, %v207_v15, 0.0  ;;  %433 = vmatprep.subr.msk.bf16.mxu0 %vm305_vm10, %v291_v12  ;;  %v299_v26 = vpop.permute.xlu0 %298 }
  0xb7   :  { %v215_v4 = vsel %vm677_vm8, %v205_v37, 0.0  ;;  %362 = vmatpush1.bf16.msra.mxu1 %v288_v13  ;;  %v290_v17 = vpack.c.bf16 %v213_v16, %v213_v16 }
  0xb8   :  { %v292_v18 = vpack.c.bf16 %v215_v4, %v215_v4  ;;  %435 = vmatprep.subr.msk.bf16.mxu1 %vm305_vm10, %v293_v14 }
  0xb9   :  { %v307_v19 = vsel %vm305_vm10, %v290_v17, 0 }
  0xba   :  { %v313_v21 = vsel %vm305_vm10, %v292_v18, 0  ;;  %323 = vmatpush1.bf16.msra.mxu0 %v307_v19 }
  0xbb   :  { %364 = vmatpush1.bf16.msra.mxu1 %v313_v21 }
  0xbd   :  { %434 = vmatmul.mubr.msk.bf16.vlgmr.msra.gmra.mrb[0].mxu0 %vm301_vm12, %v294_v9 }
  0xbe   :  { %436 = vmatmul.mubr.msk.bf16.vlgmr.msra.gmra.mrb[0].mxu1 %vm301_vm12, %v294_v9 }
 0x190   :  { %v352_v24 = vpop.f32.mrb[0].mxu0 }
 0x191   :  { %v353_v33 = vadd.f32 %v352_v24, %v299_v26  ;;  %v393_v31 = vpop.f32.mrb[0].mxu1  ;;  %v354_v32 = vpop.f32.mrb[1].mxu0 }
 0x192   :  { %v394_v25 = vadd.f32 %v393_v31, %v299_v26  ;;  %v355_v28 = vadd.f32 %v354_v32, %v299_v26  ;;  %v395_v34 = vpop.f32.mrb[1].mxu1  ;;  %v356_v39 = vpop.f32.mrb[2].mxu0 }
 0x193   :  { %v400_v40 = vadd.f32 %v353_v33, %v622_v0  ;;  %v396_v41 = vadd.f32 %v395_v34, %v299_v26  ;;  %v397_v44 = vpop.f32.mrb[2].mxu1  ;;  %v357_v45 = vpop.f32.mrb[3].mxu0 }
 0x194   :  { %v402_v46 = vadd.f32 %v394_v25, %v624_v1  ;;  %v401_v48 = vadd.f32 %v355_v28, %v628_v2  ;;  %v398_v36 = vpop.f32.mrb[3].mxu1 }
 0x195   :  { %v404_v51 = vmax.f32 %v400_v40, 0.0  ;;  %v403_v38 = vadd.f32 %v396_v41, %v632_v3 }
 0x196   :  { %v406_v49 = vmax.f32 %v402_v46, 0.0  ;;  %v405_v50 = vmax.f32 %v401_v48, 0.0 }
 0x197   :  { %v407_v52 = vmax.f32 %v403_v38, 0.0 }
 0x198   :  { %v412_v53 = vcombine.low %v404_v51, %v405_v50 }
 0x199   :  { %v413_v54 = vcombine.low %v406_v49, %v407_v52 }
 0x19a   :  { %416 = vst [vmem:[#allocation5] sm:$0xff] %v412_v53 }
 0x19b   :  { %417 = vst [vmem:[#allocation5 + $0x8] sm:$0xff] %v413_v54 }
 0x19c   :  { %564 = shalt.err (!%p561_p12)
}
 0x19d   :  { %s565_s11 = scalar_lea.hbm %s925_s3, 256 }
 0x19e   :  { %p566_p13 = scmp.ne.s32.totalorder %s925_s3, %s565_s11  ;;  %p569_p0 = scmp.lt.u32.totalorder %s565_s11, %s925_s3 }
 0x1a0   :  { %p571_p1 = pnand %p569_p0, %p566_p13 }
 0x1a2   :  { %574 = shalt.err (!%p571_p1)
}
 0x1a3   :  { %427 = dma.vmem_to_hbm [thread:$0]  %s425_s7, 256, %s925_s3, [#allocation4]  }
 0x1a4   :  { %577 = dma.done.wait [#allocation4], 256  }
 0x1a5   :  { %578 = vsyncadd [#allocation4], 4294967040 }
 0x1a6   :  { %431 = vsyncpa [#allocation3], 1 }
 0x1a7   :  { %432 = vsyncpa [#allocation4], 1 }

</bundles_post_ra>
